<compile_context>
chip_gen: v6e
topology: v6e:2x2x1
jax: 0.10.0
libtpu: 0.0.40
codegen_flags: <defaults>
</compile_context>

<pallas_src>
import jax
import jax.numpy as jnp
from jax.experimental import pallas as pl
from jax.experimental.pallas import tpu as pltpu

LANES = 128


def ffnet_kernel(x_ref, w1_ref, b1_ref, w2_ref, b2_ref, o_ref):
    # x_ref:  (4, TBR, 128) VMEM  -- 4 input features, batch dense on (sublane, lane)
    # w1_ref: (4, 5) SMEM   b1_ref: (5,) SMEM
    # w2_ref: (5, 4) SMEM   b2_ref: (4,) SMEM
    # o_ref:  (4, TBR, 128) VMEM  -- 4 output features
    x0 = x_ref[0]
    x1 = x_ref[1]
    x2 = x_ref[2]
    x3 = x_ref[3]

    # Hidden layer (5 units): VPU broadcast multiply-accumulates (no MXU for
    # a K=4 contraction), scalar weights splatted from SMEM.
    h = []
    for j in range(5):
        acc = (w1_ref[0, j] * x0
               + w1_ref[1, j] * x1
               + w1_ref[2, j] * x2
               + w1_ref[3, j] * x3
               + b1_ref[j])
        h.append(jnp.maximum(acc, 0.0))  # ReLU between FFNet layers

    # Output layer (4 units).
    for k in range(4):
        o_ref[k] = (w2_ref[0, k] * h[0]
                    + w2_ref[1, k] * h[1]
                    + w2_ref[2, k] * h[2]
                    + w2_ref[3, k] * h[3]
                    + w2_ref[4, k] * h[4]
                    + b2_ref[k])


def model1_forward(x, params, block_rows=128):
    """x: (B, 2, 2) float32 -> (B, 2, 2) float32."""
    w1, b1, w2, b2 = params
    B = x.shape[0]
    x_flat = x.reshape(B, 4)  # nn.Flatten()
    assert x_flat.shape[1] == 4, "FFNet arch=(4,5,4) expects 4 input features"

    # Lane-dense layout: batch occupies the last two (sublane, lane) axes.
    rows_needed = pl.cdiv(B, LANES)
    tbr = min(block_rows, max(8, ((rows_needed + 7) // 8) * 8))  # multiple of 8
    tile_batch = tbr * LANES
    n_tiles = pl.cdiv(B, tile_batch)
    Bp = n_tiles * tile_batch

    xT = jnp.pad(x_flat.T, ((0, 0), (0, Bp - B)))  # (4, Bp), zero-pad ragged tail
    x3 = xT.reshape(4, Bp // LANES, LANES)         # (4, Bp/128, 128)

    y3 = pl.pallas_call(
        ffnet_kernel,
        out_shape=jax.ShapeDtypeStruct((4, Bp // LANES, LANES), jnp.float32),
        grid=(n_tiles,),
        in_specs=[
            pl.BlockSpec((4, tbr, LANES), lambda i: (0, i, 0)),
            pl.BlockSpec(memory_space=pltpu.MemorySpace.SMEM),  # w1
            pl.BlockSpec(memory_space=pltpu.MemorySpace.SMEM),  # b1
            pl.BlockSpec(memory_space=pltpu.MemorySpace.SMEM),  # w2
            pl.BlockSpec(memory_space=pltpu.MemorySpace.SMEM),  # b2
        ],
        out_specs=pl.BlockSpec((4, tbr, LANES), lambda i: (0, i, 0)),
        compiler_params=pltpu.CompilerParams(
            dimension_semantics=("parallel",),          # v7x: split tiles over 2 TCs
            vmem_limit_bytes=32 * 1024 * 1024,          # explicit; safe on v5e/v6e/v7x
        ),
    )(x3, w1, b1, w2, b2)

    y_flat = y3.reshape(4, Bp)[:, :B].T  # (B, 4), drop padding
    return y_flat.reshape(-1, 2, 2)      # .reshape(-1, 2, 2)


def init_params(key):
    """Deterministic init matching nn.Linear shapes (uniform +/- 1/sqrt(fan_in))."""
    k1, k2, k3, k4 = jax.random.split(key, 4)
    lim1 = 1.0 / jnp.sqrt(4.0)
    lim2 = 1.0 / jnp.sqrt(5.0)
    w1 = jax.random.uniform(k1, (4, 5), jnp.float32, -lim1, lim1)
    b1 = jax.random.uniform(k2, (5,), jnp.float32, -lim1, lim1)
    w2 = jax.random.uniform(k3, (5, 4), jnp.float32, -lim2, lim2)
    b2 = jax.random.uniform(k4, (4,), jnp.float32, -lim2, lim2)
    return w1, b1, w2, b2


if __name__ == "__main__":
    key = jax.random.PRNGKey(0)
    k_x, k_p = jax.random.split(key)

    # Small batch; (2, 2) spatial flattens to the 4 features FFNet expects.
    B = 8
    x = jax.random.normal(k_x, (B, 2, 2), dtype=jnp.float32)
    params = init_params(k_p)

    fwd = jax.jit(model1_forward)
    out = jax.block_until_ready(fwd(x, params))

    # Reference check in plain JAX.
    w1, b1, w2, b2 = params
    ref = (jnp.maximum(x.reshape(B, 4) @ w1 + b1[None, :], 0.0) @ w2
           + b2[None, :]).reshape(-1, 2, 2)
    assert out.shape == (B, 2, 2)
    assert jnp.allclose(out, ref, atol=1e-5, rtol=1e-5)

    print("KERNEL_OK")
</pallas_src>

<mosaic_0001>
module attributes {stable_mosaic.version = 11 : i64} {
  func.func @ffnet_kernel(%arg0: i32, %arg1: memref<4x8x128xf32, #tpu.memory_space<vmem>>, %arg2: memref<4x5xf32, #tpu.memory_space<smem>>, %arg3: memref<5xf32, #tpu.memory_space<smem>>, %arg4: memref<5x4xf32, #tpu.memory_space<smem>>, %arg5: memref<4xf32, #tpu.memory_space<smem>>, %arg6: memref<4x8x128xf32, #tpu.memory_space<vmem>>) attributes {dimension_semantics = [#tpu.dimension_semantics<parallel>], iteration_bounds = array<i64: 1>, scalar_prefetch = 0 : i64, scratch_operands = 0 : i64, tpu.core_type = #tpu.core_type<tc>, window_params = [{transform_indices = @transform_0, window_bounds = array<i64: 4, 8, 128>}, {transform_indices = @transform_1, window_bounds = array<i64: 4, 5>}, {transform_indices = @transform_2, window_bounds = array<i64: 5>}, {transform_indices = @transform_3, window_bounds = array<i64: 5, 4>}, {transform_indices = @transform_4, window_bounds = array<i64: 4>}, {transform_indices = @transform_5, window_bounds = array<i64: 4, 8, 128>}]} {
    %c0 = arith.constant 0 : index
    %c0_0 = arith.constant 0 : index
    %c0_1 = arith.constant 0 : index
    %0 = vector.load %arg1[%c0, %c0_0, %c0_1] : memref<4x8x128xf32, #tpu.memory_space<vmem>>, vector<1x8x128xf32>
    %1 = vector.shape_cast %0 : vector<1x8x128xf32> to vector<8x128xf32>
    %c1 = arith.constant 1 : index
    %c0_2 = arith.constant 0 : index
    %c0_3 = arith.constant 0 : index
    %2 = vector.load %arg1[%c1, %c0_2, %c0_3] : memref<4x8x128xf32, #tpu.memory_space<vmem>>, vector<1x8x128xf32>
    %3 = vector.shape_cast %2 : vector<1x8x128xf32> to vector<8x128xf32>
    %c2 = arith.constant 2 : index
    %c0_4 = arith.constant 0 : index
    %c0_5 = arith.constant 0 : index
    %4 = vector.load %arg1[%c2, %c0_4, %c0_5] : memref<4x8x128xf32, #tpu.memory_space<vmem>>, vector<1x8x128xf32>
    %5 = vector.shape_cast %4 : vector<1x8x128xf32> to vector<8x128xf32>
    %c3 = arith.constant 3 : index
    %c0_6 = arith.constant 0 : index
    %c0_7 = arith.constant 0 : index
    %6 = vector.load %arg1[%c3, %c0_6, %c0_7] : memref<4x8x128xf32, #tpu.memory_space<vmem>>, vector<1x8x128xf32>
    %7 = vector.shape_cast %6 : vector<1x8x128xf32> to vector<8x128xf32>
    %c0_8 = arith.constant 0 : index
    %c0_9 = arith.constant 0 : index
    %8 = memref.load %arg2[%c0_8, %c0_9] : memref<4x5xf32, #tpu.memory_space<smem>>
    %9 = vector.broadcast %8 : f32 to vector<8x128xf32>
    %10 = arith.mulf %9, %1 : vector<8x128xf32>
    %c1_10 = arith.constant 1 : index
    %c0_11 = arith.constant 0 : index
    %11 = memref.load %arg2[%c1_10, %c0_11] : memref<4x5xf32, #tpu.memory_space<smem>>
    %12 = vector.broadcast %11 : f32 to vector<8x128xf32>
    %13 = arith.mulf %12, %3 : vector<8x128xf32>
    %14 = arith.addf %10, %13 : vector<8x128xf32>
    %c2_12 = arith.constant 2 : index
    %c0_13 = arith.constant 0 : index
    %15 = memref.load %arg2[%c2_12, %c0_13] : memref<4x5xf32, #tpu.memory_space<smem>>
    %16 = vector.broadcast %15 : f32 to vector<8x128xf32>
    %17 = arith.mulf %16, %5 : vector<8x128xf32>
    %18 = arith.addf %14, %17 : vector<8x128xf32>
    %c3_14 = arith.constant 3 : index
    %c0_15 = arith.constant 0 : index
    %19 = memref.load %arg2[%c3_14, %c0_15] : memref<4x5xf32, #tpu.memory_space<smem>>
    %20 = vector.broadcast %19 : f32 to vector<8x128xf32>
    %21 = arith.mulf %20, %7 : vector<8x128xf32>
    %22 = arith.addf %18, %21 : vector<8x128xf32>
    %c0_16 = arith.constant 0 : index
    %23 = memref.load %arg3[%c0_16] : memref<5xf32, #tpu.memory_space<smem>>
    %24 = vector.broadcast %23 : f32 to vector<8x128xf32>
    %25 = arith.addf %22, %24 : vector<8x128xf32>
    %cst = arith.constant 0.000000e+00 : f32
    %26 = vector.broadcast %cst : f32 to vector<8x128xf32>
    %27 = arith.maximumf %25, %26 : vector<8x128xf32>
    %c0_17 = arith.constant 0 : index
    %c1_18 = arith.constant 1 : index
    %28 = memref.load %arg2[%c0_17, %c1_18] : memref<4x5xf32, #tpu.memory_space<smem>>
    %29 = vector.broadcast %28 : f32 to vector<8x128xf32>
    %30 = arith.mulf %29, %1 : vector<8x128xf32>
    %c1_19 = arith.constant 1 : index
    %c1_20 = arith.constant 1 : index
    %31 = memref.load %arg2[%c1_19, %c1_20] : memref<4x5xf32, #tpu.memory_space<smem>>
    %32 = vector.broadcast %31 : f32 to vector<8x128xf32>
    %33 = arith.mulf %32, %3 : vector<8x128xf32>
    %34 = arith.addf %30, %33 : vector<8x128xf32>
    %c2_21 = arith.constant 2 : index
    %c1_22 = arith.constant 1 : index
    %35 = memref.load %arg2[%c2_21, %c1_22] : memref<4x5xf32, #tpu.memory_space<smem>>
    %36 = vector.broadcast %35 : f32 to vector<8x128xf32>
    %37 = arith.mulf %36, %5 : vector<8x128xf32>
    %38 = arith.addf %34, %37 : vector<8x128xf32>
    %c3_23 = arith.constant 3 : index
    %c1_24 = arith.constant 1 : index
    %39 = memref.load %arg2[%c3_23, %c1_24] : memref<4x5xf32, #tpu.memory_space<smem>>
    %40 = vector.broadcast %39 : f32 to vector<8x128xf32>
    %41 = arith.mulf %40, %7 : vector<8x128xf32>
    %42 = arith.addf %38, %41 : vector<8x128xf32>
    %c1_25 = arith.constant 1 : index
    %43 = memref.load %arg3[%c1_25] : memref<5xf32, #tpu.memory_space<smem>>
    %44 = vector.broadcast %43 : f32 to vector<8x128xf32>
    %45 = arith.addf %42, %44 : vector<8x128xf32>
    %cst_26 = arith.constant 0.000000e+00 : f32
    %46 = vector.broadcast %cst_26 : f32 to vector<8x128xf32>
    %47 = arith.maximumf %45, %46 : vector<8x128xf32>
    %c0_27 = arith.constant 0 : index
    %c2_28 = arith.constant 2 : index
    %48 = memref.load %arg2[%c0_27, %c2_28] : memref<4x5xf32, #tpu.memory_space<smem>>
    %49 = vector.broadcast %48 : f32 to vector<8x128xf32>
    %50 = arith.mulf %49, %1 : vector<8x128xf32>
    %c1_29 = arith.constant 1 : index
    %c2_30 = arith.constant 2 : index
    %51 = memref.load %arg2[%c1_29, %c2_30] : memref<4x5xf32, #tpu.memory_space<smem>>
    %52 = vector.broadcast %51 : f32 to vector<8x128xf32>
    %53 = arith.mulf %52, %3 : vector<8x128xf32>
    %54 = arith.addf %50, %53 : vector<8x128xf32>
    %c2_31 = arith.constant 2 : index
    %c2_32 = arith.constant 2 : index
    %55 = memref.load %arg2[%c2_31, %c2_32] : memref<4x5xf32, #tpu.memory_space<smem>>
    %56 = vector.broadcast %55 : f32 to vector<8x128xf32>
    %57 = arith.mulf %56, %5 : vector<8x128xf32>
    %58 = arith.addf %54, %57 : vector<8x128xf32>
    %c3_33 = arith.constant 3 : index
    %c2_34 = arith.constant 2 : index
    %59 = memref.load %arg2[%c3_33, %c2_34] : memref<4x5xf32, #tpu.memory_space<smem>>
    %60 = vector.broadcast %59 : f32 to vector<8x128xf32>
    %61 = arith.mulf %60, %7 : vector<8x128xf32>
    %62 = arith.addf %58, %61 : vector<8x128xf32>
    %c2_35 = arith.constant 2 : index
    %63 = memref.load %arg3[%c2_35] : memref<5xf32, #tpu.memory_space<smem>>
    %64 = vector.broadcast %63 : f32 to vector<8x128xf32>
    %65 = arith.addf %62, %64 : vector<8x128xf32>
    %cst_36 = arith.constant 0.000000e+00 : f32
    %66 = vector.broadcast %cst_36 : f32 to vector<8x128xf32>
    %67 = arith.maximumf %65, %66 : vector<8x128xf32>
    %c0_37 = arith.constant 0 : index
    %c3_38 = arith.constant 3 : index
    %68 = memref.load %arg2[%c0_37, %c3_38] : memref<4x5xf32, #tpu.memory_space<smem>>
    %69 = vector.broadcast %68 : f32 to vector<8x128xf32>
    %70 = arith.mulf %69, %1 : vector<8x128xf32>
    %c1_39 = arith.constant 1 : index
    %c3_40 = arith.constant 3 : index
    %71 = memref.load %arg2[%c1_39, %c3_40] : memref<4x5xf32, #tpu.memory_space<smem>>
    %72 = vector.broadcast %71 : f32 to vector<8x128xf32>
    %73 = arith.mulf %72, %3 : vector<8x128xf32>
    %74 = arith.addf %70, %73 : vector<8x128xf32>
    %c2_41 = arith.constant 2 : index
    %c3_42 = arith.constant 3 : index
    %75 = memref.load %arg2[%c2_41, %c3_42] : memref<4x5xf32, #tpu.memory_space<smem>>
    %76 = vector.broadcast %75 : f32 to vector<8x128xf32>
    %77 = arith.mulf %76, %5 : vector<8x128xf32>
    %78 = arith.addf %74, %77 : vector<8x128xf32>
    %c3_43 = arith.constant 3 : index
    %c3_44 = arith.constant 3 : index
    %79 = memref.load %arg2[%c3_43, %c3_44] : memref<4x5xf32, #tpu.memory_space<smem>>
    %80 = vector.broadcast %79 : f32 to vector<8x128xf32>
    %81 = arith.mulf %80, %7 : vector<8x128xf32>
    %82 = arith.addf %78, %81 : vector<8x128xf32>
    %c3_45 = arith.constant 3 : index
    %83 = memref.load %arg3[%c3_45] : memref<5xf32, #tpu.memory_space<smem>>
    %84 = vector.broadcast %83 : f32 to vector<8x128xf32>
    %85 = arith.addf %82, %84 : vector<8x128xf32>
    %cst_46 = arith.constant 0.000000e+00 : f32
    %86 = vector.broadcast %cst_46 : f32 to vector<8x128xf32>
    %87 = arith.maximumf %85, %86 : vector<8x128xf32>
    %c0_47 = arith.constant 0 : index
    %c4 = arith.constant 4 : index
    %88 = memref.load %arg2[%c0_47, %c4] : memref<4x5xf32, #tpu.memory_space<smem>>
    %89 = vector.broadcast %88 : f32 to vector<8x128xf32>
    %90 = arith.mulf %89, %1 : vector<8x128xf32>
    %c1_48 = arith.constant 1 : index
    %c4_49 = arith.constant 4 : index
    %91 = memref.load %arg2[%c1_48, %c4_49] : memref<4x5xf32, #tpu.memory_space<smem>>
    %92 = vector.broadcast %91 : f32 to vector<8x128xf32>
    %93 = arith.mulf %92, %3 : vector<8x128xf32>
    %94 = arith.addf %90, %93 : vector<8x128xf32>
    %c2_50 = arith.constant 2 : index
    %c4_51 = arith.constant 4 : index
    %95 = memref.load %arg2[%c2_50, %c4_51] : memref<4x5xf32, #tpu.memory_space<smem>>
    %96 = vector.broadcast %95 : f32 to vector<8x128xf32>
    %97 = arith.mulf %96, %5 : vector<8x128xf32>
    %98 = arith.addf %94, %97 : vector<8x128xf32>
    %c3_52 = arith.constant 3 : index
    %c4_53 = arith.constant 4 : index
    %99 = memref.load %arg2[%c3_52, %c4_53] : memref<4x5xf32, #tpu.memory_space<smem>>
    %100 = vector.broadcast %99 : f32 to vector<8x128xf32>
    %101 = arith.mulf %100, %7 : vector<8x128xf32>
    %102 = arith.addf %98, %101 : vector<8x128xf32>
    %c4_54 = arith.constant 4 : index
    %103 = memref.load %arg3[%c4_54] : memref<5xf32, #tpu.memory_space<smem>>
    %104 = vector.broadcast %103 : f32 to vector<8x128xf32>
    %105 = arith.addf %102, %104 : vector<8x128xf32>
    %cst_55 = arith.constant 0.000000e+00 : f32
    %106 = vector.broadcast %cst_55 : f32 to vector<8x128xf32>
    %107 = arith.maximumf %105, %106 : vector<8x128xf32>
    %c0_56 = arith.constant 0 : index
    %c0_57 = arith.constant 0 : index
    %108 = memref.load %arg4[%c0_56, %c0_57] : memref<5x4xf32, #tpu.memory_space<smem>>
    %109 = vector.broadcast %108 : f32 to vector<8x128xf32>
    %110 = arith.mulf %109, %27 : vector<8x128xf32>
    %c1_58 = arith.constant 1 : index
    %c0_59 = arith.constant 0 : index
    %111 = memref.load %arg4[%c1_58, %c0_59] : memref<5x4xf32, #tpu.memory_space<smem>>
    %112 = vector.broadcast %111 : f32 to vector<8x128xf32>
    %113 = arith.mulf %112, %47 : vector<8x128xf32>
    %114 = arith.addf %110, %113 : vector<8x128xf32>
    %c2_60 = arith.constant 2 : index
    %c0_61 = arith.constant 0 : index
    %115 = memref.load %arg4[%c2_60, %c0_61] : memref<5x4xf32, #tpu.memory_space<smem>>
    %116 = vector.broadcast %115 : f32 to vector<8x128xf32>
    %117 = arith.mulf %116, %67 : vector<8x128xf32>
    %118 = arith.addf %114, %117 : vector<8x128xf32>
    %c3_62 = arith.constant 3 : index
    %c0_63 = arith.constant 0 : index
    %119 = memref.load %arg4[%c3_62, %c0_63] : memref<5x4xf32, #tpu.memory_space<smem>>
    %120 = vector.broadcast %119 : f32 to vector<8x128xf32>
    %121 = arith.mulf %120, %87 : vector<8x128xf32>
    %122 = arith.addf %118, %121 : vector<8x128xf32>
    %c4_64 = arith.constant 4 : index
    %c0_65 = arith.constant 0 : index
    %123 = memref.load %arg4[%c4_64, %c0_65] : memref<5x4xf32, #tpu.memory_space<smem>>
    %124 = vector.broadcast %123 : f32 to vector<8x128xf32>
    %125 = arith.mulf %124, %107 : vector<8x128xf32>
    %126 = arith.addf %122, %125 : vector<8x128xf32>
    %c0_66 = arith.constant 0 : index
    %127 = memref.load %arg5[%c0_66] : memref<4xf32, #tpu.memory_space<smem>>
    %128 = vector.broadcast %127 : f32 to vector<8x128xf32>
    %129 = arith.addf %126, %128 : vector<8x128xf32>
    %c0_67 = arith.constant 0 : index
    %c0_68 = arith.constant 0 : index
    %c0_69 = arith.constant 0 : index
    %130 = vector.load %arg6[%c0_67, %c0_68, %c0_69] : memref<4x8x128xf32, #tpu.memory_space<vmem>>, vector<1x8x128xf32>
    %131 = vector.shape_cast %130 : vector<1x8x128xf32> to vector<8x128xf32>
    %132 = vector.shape_cast %129 : vector<8x128xf32> to vector<1x8x128xf32>
    tpu.vector_store %arg6[%c0_67, %c0_68, %c0_69], %132 {strides = array<i32>} : memref<4x8x128xf32, #tpu.memory_space<vmem>>, vector<1x8x128xf32>,
    %c0_70 = arith.constant 0 : index
    %c1_71 = arith.constant 1 : index
    %133 = memref.load %arg4[%c0_70, %c1_71] : memref<5x4xf32, #tpu.memory_space<smem>>
    %134 = vector.broadcast %133 : f32 to vector<8x128xf32>
    %135 = arith.mulf %134, %27 : vector<8x128xf32>
    %c1_72 = arith.constant 1 : index
    %c1_73 = arith.constant 1 : index
    %136 = memref.load %arg4[%c1_72, %c1_73] : memref<5x4xf32, #tpu.memory_space<smem>>
    %137 = vector.broadcast %136 : f32 to vector<8x128xf32>
    %138 = arith.mulf %137, %47 : vector<8x128xf32>
    %139 = arith.addf %135, %138 : vector<8x128xf32>
    %c2_74 = arith.constant 2 : index
    %c1_75 = arith.constant 1 : index
    %140 = memref.load %arg4[%c2_74, %c1_75] : memref<5x4xf32, #tpu.memory_space<smem>>
    %141 = vector.broadcast %140 : f32 to vector<8x128xf32>
    %142 = arith.mulf %141, %67 : vector<8x128xf32>
    %143 = arith.addf %139, %142 : vector<8x128xf32>
    %c3_76 = arith.constant 3 : index
    %c1_77 = arith.constant 1 : index
    %144 = memref.load %arg4[%c3_76, %c1_77] : memref<5x4xf32, #tpu.memory_space<smem>>
    %145 = vector.broadcast %144 : f32 to vector<8x128xf32>
    %146 = arith.mulf %145, %87 : vector<8x128xf32>
    %147 = arith.addf %143, %146 : vector<8x128xf32>
    %c4_78 = arith.constant 4 : index
    %c1_79 = arith.constant 1 : index
    %148 = memref.load %arg4[%c4_78, %c1_79] : memref<5x4xf32, #tpu.memory_space<smem>>
    %149 = vector.broadcast %148 : f32 to vector<8x128xf32>
    %150 = arith.mulf %149, %107 : vector<8x128xf32>
    %151 = arith.addf %147, %150 : vector<8x128xf32>
    %c1_80 = arith.constant 1 : index
    %152 = memref.load %arg5[%c1_80] : memref<4xf32, #tpu.memory_space<smem>>
    %153 = vector.broadcast %152 : f32 to vector<8x128xf32>
    %154 = arith.addf %151, %153 : vector<8x128xf32>
    %c1_81 = arith.constant 1 : index
    %c0_82 = arith.constant 0 : index
    %c0_83 = arith.constant 0 : index
    %155 = vector.load %arg6[%c1_81, %c0_82, %c0_83] : memref<4x8x128xf32, #tpu.memory_space<vmem>>, vector<1x8x128xf32>
    %156 = vector.shape_cast %155 : vector<1x8x128xf32> to vector<8x128xf32>
    %157 = vector.shape_cast %154 : vector<8x128xf32> to vector<1x8x128xf32>
    tpu.vector_store %arg6[%c1_81, %c0_82, %c0_83], %157 {strides = array<i32>} : memref<4x8x128xf32, #tpu.memory_space<vmem>>, vector<1x8x128xf32>,
    %c0_84 = arith.constant 0 : index
    %c2_85 = arith.constant 2 : index
    %158 = memref.load %arg4[%c0_84, %c2_85] : memref<5x4xf32, #tpu.memory_space<smem>>
    %159 = vector.broadcast %158 : f32 to vector<8x128xf32>
    %160 = arith.mulf %159, %27 : vector<8x128xf32>
    %c1_86 = arith.constant 1 : index
    %c2_87 = arith.constant 2 : index
    %161 = memref.load %arg4[%c1_86, %c2_87] : memref<5x4xf32, #tpu.memory_space<smem>>
    %162 = vector.broadcast %161 : f32 to vector<8x128xf32>
    %163 = arith.mulf %162, %47 : vector<8x128xf32>
    %164 = arith.addf %160, %163 : vector<8x128xf32>
    %c2_88 = arith.constant 2 : index
    %c2_89 = arith.constant 2 : index
    %165 = memref.load %arg4[%c2_88, %c2_89] : memref<5x4xf32, #tpu.memory_space<smem>>
    %166 = vector.broadcast %165 : f32 to vector<8x128xf32>
    %167 = arith.mulf %166, %67 : vector<8x128xf32>
    %168 = arith.addf %164, %167 : vector<8x128xf32>
    %c3_90 = arith.constant 3 : index
    %c2_91 = arith.constant 2 : index
    %169 = memref.load %arg4[%c3_90, %c2_91] : memref<5x4xf32, #tpu.memory_space<smem>>
    %170 = vector.broadcast %169 : f32 to vector<8x128xf32>
    %171 = arith.mulf %170, %87 : vector<8x128xf32>
    %172 = arith.addf %168, %171 : vector<8x128xf32>
    %c4_92 = arith.constant 4 : index
    %c2_93 = arith.constant 2 : index
    %173 = memref.load %arg4[%c4_92, %c2_93] : memref<5x4xf32, #tpu.memory_space<smem>>
    %174 = vector.broadcast %173 : f32 to vector<8x128xf32>
    %175 = arith.mulf %174, %107 : vector<8x128xf32>
    %176 = arith.addf %172, %175 : vector<8x128xf32>
    %c2_94 = arith.constant 2 : index
    %177 = memref.load %arg5[%c2_94] : memref<4xf32, #tpu.memory_space<smem>>
    %178 = vector.broadcast %177 : f32 to vector<8x128xf32>
    %179 = arith.addf %176, %178 : vector<8x128xf32>
    %c2_95 = arith.constant 2 : index
    %c0_96 = arith.constant 0 : index
    %c0_97 = arith.constant 0 : index
    %180 = vector.load %arg6[%c2_95, %c0_96, %c0_97] : memref<4x8x128xf32, #tpu.memory_space<vmem>>, vector<1x8x128xf32>
    %181 = vector.shape_cast %180 : vector<1x8x128xf32> to vector<8x128xf32>
    %182 = vector.shape_cast %179 : vector<8x128xf32> to vector<1x8x128xf32>
    tpu.vector_store %arg6[%c2_95, %c0_96, %c0_97], %182 {strides = array<i32>} : memref<4x8x128xf32, #tpu.memory_space<vmem>>, vector<1x8x128xf32>,
    %c0_98 = arith.constant 0 : index
    %c3_99 = arith.constant 3 : index
    %183 = memref.load %arg4[%c0_98, %c3_99] : memref<5x4xf32, #tpu.memory_space<smem>>
    %184 = vector.broadcast %183 : f32 to vector<8x128xf32>
    %185 = arith.mulf %184, %27 : vector<8x128xf32>
    %c1_100 = arith.constant 1 : index
    %c3_101 = arith.constant 3 : index
    %186 = memref.load %arg4[%c1_100, %c3_101] : memref<5x4xf32, #tpu.memory_space<smem>>
    %187 = vector.broadcast %186 : f32 to vector<8x128xf32>
    %188 = arith.mulf %187, %47 : vector<8x128xf32>
    %189 = arith.addf %185, %188 : vector<8x128xf32>
    %c2_102 = arith.constant 2 : index
    %c3_103 = arith.constant 3 : index
    %190 = memref.load %arg4[%c2_102, %c3_103] : memref<5x4xf32, #tpu.memory_space<smem>>
    %191 = vector.broadcast %190 : f32 to vector<8x128xf32>
    %192 = arith.mulf %191, %67 : vector<8x128xf32>
    %193 = arith.addf %189, %192 : vector<8x128xf32>
    %c3_104 = arith.constant 3 : index
    %c3_105 = arith.constant 3 : index
    %194 = memref.load %arg4[%c3_104, %c3_105] : memref<5x4xf32, #tpu.memory_space<smem>>
    %195 = vector.broadcast %194 : f32 to vector<8x128xf32>
    %196 = arith.mulf %195, %87 : vector<8x128xf32>
    %197 = arith.addf %193, %196 : vector<8x128xf32>
    %c4_106 = arith.constant 4 : index
    %c3_107 = arith.constant 3 : index
    %198 = memref.load %arg4[%c4_106, %c3_107] : memref<5x4xf32, #tpu.memory_space<smem>>
    %199 = vector.broadcast %198 : f32 to vector<8x128xf32>
    %200 = arith.mulf %199, %107 : vector<8x128xf32>
    %201 = arith.addf %197, %200 : vector<8x128xf32>
    %c3_108 = arith.constant 3 : index
    %202 = memref.load %arg5[%c3_108] : memref<4xf32, #tpu.memory_space<smem>>
    %203 = vector.broadcast %202 : f32 to vector<8x128xf32>
    %204 = arith.addf %201, %203 : vector<8x128xf32>
    %c3_109 = arith.constant 3 : index
    %c0_110 = arith.constant 0 : index
    %c0_111 = arith.constant 0 : index
    %205 = vector.load %arg6[%c3_109, %c0_110, %c0_111] : memref<4x8x128xf32, #tpu.memory_space<vmem>>, vector<1x8x128xf32>
    %206 = vector.shape_cast %205 : vector<1x8x128xf32> to vector<8x128xf32>
    %207 = vector.shape_cast %204 : vector<8x128xf32> to vector<1x8x128xf32>
    tpu.vector_store %arg6[%c3_109, %c0_110, %c0_111], %207 {strides = array<i32>} : memref<4x8x128xf32, #tpu.memory_space<vmem>>, vector<1x8x128xf32>,
    return
  }
  func.func @transform_0(%arg0: i32) -> (i32, i32, i32) {
    %c0_i32 = arith.constant 0 : i32
    %c0_i32_0 = arith.constant 0 : i32
    %c0_i32_1 = arith.constant 0 : i32
    return %c0_i32, %arg0, %c0_i32_0 : i32, i32, i32
  }
  func.func @transform_1(%arg0: i32) -> (i32, i32) {
    %c0_i32 = arith.constant 0 : i32
    %c0_i32_0 = arith.constant 0 : i32
    %c0_i32_1 = arith.constant 0 : i32
    return %c0_i32, %c0_i32_0 : i32, i32
  }
  func.func @transform_2(%arg0: i32) -> i32 {
    %c0_i32 = arith.constant 0 : i32
    %c0_i32_0 = arith.constant 0 : i32
    return %c0_i32 : i32
  }
  func.func @transform_3(%arg0: i32) -> (i32, i32) {
    %c0_i32 = arith.constant 0 : i32
    %c0_i32_0 = arith.constant 0 : i32
    %c0_i32_1 = arith.constant 0 : i32
    return %c0_i32, %c0_i32_0 : i32, i32
  }
  func.func @transform_4(%arg0: i32) -> i32 {
    %c0_i32 = arith.constant 0 : i32
    %c0_i32_0 = arith.constant 0 : i32
    return %c0_i32 : i32
  }
  func.func @transform_5(%arg0: i32) -> (i32, i32, i32) {
    %c0_i32 = arith.constant 0 : i32
    %c0_i32_0 = arith.constant 0 : i32
    %c0_i32_1 = arith.constant 0 : i32
    return %c0_i32, %arg0, %c0_i32_0 : i32, i32, i32
  }
}

</mosaic_0001>

<bundles_post_ra>
// kernel: model1_forward.1
= control target key start
LH: loop header
LB: loop body
LE: loop exit
PB: predicated region body
PF: predicated region fallthrough
CT: control target
= control target key end

     0   :  { %10 = vsyncpa [#allocation3], 0  ;;  %s533_s0 = inlined_call_operand.vmem [shape: f32[4,8,128], index: 0, kind: input, shape index: {}]   ;;  %s534_s1 = inlined_call_operand.vmem [shape: f32[4,5], index: 1, kind: input, shape index: {}]   ;;  %s535_s2 = inlined_call_operand.vmem [shape: f32[5], index: 2, kind: input, shape index: {}]   ;;  %s536_s3 = inlined_call_operand.vmem [shape: f32[5,4], index: 3, kind: input, shape index: {}]   ;;  %s537_s4 = inlined_call_operand.vmem [shape: f32[4], index: 4, kind: input, shape index: {}]   ;;  %s538_s5 = inlined_call_operand.vmem [shape: f32[4,8,128], index: 5, kind: output, shape index: {}]  }
   0x1   :  { %11 = vsyncpa [#allocation5], 0  ;;  %s31_s20 = sshll.u32 %s535_s2, 4  ;;  %s32_s20 = int_to_ptr.vmem [resolvable:$true] %s31_s20 }
   0x2   :  { %12 = vsyncpa [#allocation8], 0  ;;  %s21_s23 = sshll.u32 %s534_s1, 4  ;;  %s327_s24 = scalar_lea.vmem %s32_s20, 16  ;;  %s22_s23 = int_to_ptr.vmem [resolvable:$true] %s21_s23 }
   0x3   :  { %p328_p0 = scmp.ne.s32.totalorder %s32_s20, %s327_s24  ;;  %p332_p1 = scmp.lt.s32.totalorder %s32_s20, %s32_s20 }
   0x4   :  { %p333_p2 = scmp.lt.s32.totalorder %s327_s24, %s327_s24 }
   0x6   :  { %p334_p3 = por %p333_p2, %p332_p1 }
   0x8   :  { %p335_p4 = pnand %p334_p3, %p328_p0 }
   0xa   :  { %338 = shalt.err (!%p335_p4)
}
   0xb   :  { %s381_s25 = smov [#allocation4]   ;;  %s339_s26 = scalar_lea.vmem %s22_s23, 64 }
   0xc   :  { %34 = dma.vmem_to_smem %s32_s20, 16, %s381_s25, [#allocation5]  }
   0xd   :  { %p340_p5 = scmp.ne.s32.totalorder %s22_s23, %s339_s26  ;;  %p344_p6 = scmp.lt.s32.totalorder %s22_s23, %s22_s23 }
   0xe   :  { %p345_p7 = scmp.lt.s32.totalorder %s339_s26, %s339_s26 }
  0x10   :  { %p346_p8 = por %p345_p7, %p344_p6 }
  0x12   :  { %p347_p9 = pnand %p346_p8, %p340_p5 }
  0x14   :  { %350 = shalt.err (!%p347_p9)
}
  0x15   :  { %s382_s2 = smov [#allocation2]   ;;  %s41_s28 = sshll.u32 %s536_s3, 4  ;;  %s42_s28 = int_to_ptr.vmem [resolvable:$true] %s41_s28 }
  0x16   :  { %24 = dma.vmem_to_smem %s22_s23, 64, %s382_s2, [#allocation3]  }
  0x17   :  { %s51_s6 = sshll.u32 %s537_s4, 4  ;;  %s351_s7 = scalar_lea.vmem %s42_s28, 128  ;;  %s52_s6 = int_to_ptr.vmem [resolvable:$true] %s51_s6 }
  0x18   :  { %p352_p10 = scmp.ne.s32.totalorder %s42_s28, %s351_s7  ;;  %p356_p11 = scmp.lt.s32.totalorder %s42_s28, %s42_s28 }
  0x19   :  { %p357_p12 = scmp.lt.s32.totalorder %s351_s7, %s351_s7 }
  0x1b   :  { %p358_p13 = por %p357_p12, %p356_p11 }
  0x1d   :  { %p359_p0 = pnand %p358_p13, %p352_p10 }
  0x1f   :  { %362 = shalt.err (!%p359_p0)
}
  0x20   :  { %s383_s8 = smov [#allocation6]   ;;  %s363_s9 = scalar_lea.vmem %s52_s6, 16 }
  0x21   :  { %44 = dma.vmem_to_smem %s42_s28, 128, %s383_s8, [#allocation5]  }
  0x22   :  { %p364_p1 = scmp.ne.s32.totalorder %s52_s6, %s363_s9  ;;  %p368_p2 = scmp.lt.s32.totalorder %s52_s6, %s52_s6 }
  0x23   :  { %p369_p3 = scmp.lt.s32.totalorder %s363_s9, %s363_s9 }
  0x25   :  { %p370_p4 = por %p369_p3, %p368_p2 }
  0x27   :  { %p371_p5 = pnand %p370_p4, %p364_p1 }
  0x29   :  { %374 = shalt.err (!%p371_p5)
}
  0x2a   :  { %s384_s3 = smov [#allocation7]  }
  0x2b   :  { %54 = dma.vmem_to_smem %s52_s6, 16, %s384_s3, [#allocation8]  }
  0x2c   :  { %375 = dma.done.wait [#allocation3], 64  }
  0x2d   :  { %376 = vsyncadd [#allocation3], 4294967232 }
  0x2e   :  { %377 = dma.done.wait [#allocation5], 144  }
  0x2f   :  { %378 = vsyncadd [#allocation5], 4294967152 }
  0x30   :  { %379 = dma.done.wait [#allocation8], 16  }
  0x31   :  { %380 = vsyncadd [#allocation8], 4294967280 }
  0x32   :  { %67 = sfence }
  0x33   :  { %s75_s4 = sld [smem:[#allocation2]]  ;;  %v434_v0 = vld [vmem:[%s533_s0] sm:$0xff]  ;;  %v439_v1 = vld [vmem:[%s533_s0 + $0x8] sm:$0xff]  ;;  %v446_v6 = vld [vmem:[%s533_s0 + $0x10] sm:$0xff] }
  0x34   :  { %s275_s10 = sld [smem:[#allocation2 + $0x80]]  ;;  %v455_v13 = vld [vmem:[%s533_s0 + $0x18] sm:$0xff] }
  0x35   :  { %s276_s11 = sld [smem:[#allocation2 + $0x100]] }
  0x36   :  { %s427_s12 = sld [smem:[#allocation2 + $0x180]] }
  0x37   :  { %s429_s13 = sld [smem:[#allocation4]] }
  0x38   :  { %s278_s18 = sld [smem:[#allocation2 + $0x1]] }
  0x39   :  { %v76_v2 = vstv %s75_s4  ;;  %s279_s19 = sld [smem:[#allocation2 + $0x81]] }
  0x3a   :  { %v79_v3 = vstv %s275_s10  ;;  %s280_s20 = sld [smem:[#allocation2 + $0x101]]  ;;  %v77_v4 = vmul.f32 %v76_v2, %v434_v0 }
  0x3b   :  { %v80_v5 = vmul.f32 %v439_v1, %v79_v3  ;;  %s281_s21 = sld [smem:[#allocation2 + $0x181]]  ;;  %v83_v7 = vstv %s276_s11 }
  0x3c   :  { %s448_s24 = sld [smem:[#allocation4 + $0x1]]  ;;  %v84_v10 = vmul.f32 %v446_v6, %v83_v7  ;;  %v87_v14 = vstv %s427_s12 }
  0x3d   :  { %s283_s25 = sld [smem:[#allocation2 + $0x2]]  ;;  %v81_v9 = vadd.f32 %v80_v5, %v77_v4  ;;  %v88_v21 = vmul.f32 %v455_v13, %v87_v14  ;;  %v91_v34 = vstv %s429_s13 }
  0x3e   :  { %v95_v8 = vstv %s278_s18  ;;  %s284_s26 = sld [smem:[#allocation2 + $0x82]] }
  0x3f   :  { %v96_v11 = vmul.f32 %v95_v8, %v434_v0  ;;  %v98_v12 = vstv %s279_s19  ;;  %s285_s2 = sld [smem:[#allocation2 + $0x102]]  ;;  %v85_v20 = vadd.f32 %v84_v10, %v81_v9 }
  0x40   :  { %v99_v15 = vmul.f32 %v439_v1, %v98_v12  ;;  %v102_v16 = vstv %s280_s20  ;;  %s286_s28 = sld [smem:[#allocation2 + $0x182]] }
  0x41   :  { %v103_v17 = vmul.f32 %v446_v6, %v102_v16  ;;  %v106_v18 = vstv %s281_s21  ;;  %s460_s29 = sld [smem:[#allocation4 + $0x2]]  ;;  %v89_v31 = vadd.f32 %v88_v21, %v85_v20 }
  0x42   :  { %v100_v19 = vadd.f32 %v99_v15, %v96_v11  ;;  %s288_s30 = sld [smem:[#allocation2 + $0x3]]  ;;  %v107_v24 = vmul.f32 %v455_v13, %v106_v18  ;;  %v110_v37 = vstv %s448_s24 }
  0x43   :  { %v114_v22 = vstv %s283_s25  ;;  %s289_s6 = sld [smem:[#allocation2 + $0x83]]  ;;  %v92_v44 = vadd.f32 %v91_v34, %v89_v31 }
  0x44   :  { %v104_v23 = vadd.f32 %v103_v17, %v100_v19  ;;  %v115_v25 = vmul.f32 %v114_v22, %v434_v0  ;;  %v117_v26 = vstv %s284_s26  ;;  %s290_s0 = sld [smem:[#allocation2 + $0x103]] }
  0x45   :  { %v118_v27 = vmul.f32 %v439_v1, %v117_v26  ;;  %v121_v28 = vstv %s285_s2  ;;  %s291_s7 = sld [smem:[#allocation2 + $0x183]]  ;;  %v480_v56 = vmax.f32 %v92_v44, 0.0 }
  0x46   :  { %v122_v29 = vmul.f32 %v446_v6, %v121_v28  ;;  %v125_v30 = vstv %s286_s28  ;;  %s467_s8 = sld [smem:[#allocation4 + $0x3]]  ;;  %v108_v35 = vadd.f32 %v107_v24, %v104_v23 }
  0x47   :  { %v119_v32 = vadd.f32 %v118_v27, %v115_v25  ;;  %v126_v33 = vmul.f32 %v455_v13, %v125_v30  ;;  %s293_s9 = sld [smem:[#allocation2 + $0x4]]  ;;  %v129_v41 = vstv %s460_s29 }
  0x48   :  { %v133_v36 = vstv %s288_s30  ;;  %s294_s3 = sld [smem:[#allocation2 + $0x84]]  ;;  %v111_v48 = vadd.f32 %v110_v37, %v108_v35 }
  0x49   :  { %v123_v38 = vadd.f32 %v122_v29, %v119_v32  ;;  %v134_v39 = vmul.f32 %v133_v36, %v434_v0  ;;  %v136_v40 = vstv %s289_s6  ;;  %s295_s4 = sld [smem:[#allocation2 + $0x104]] }
  0x4a   :  { %v137_v42 = vmul.f32 %v439_v1, %v136_v40  ;;  %v140_v43 = vstv %s290_s0  ;;  %s296_s10 = sld [smem:[#allocation2 + $0x184]]  ;;  %v484_v60 = vmax.f32 %v111_v48, 0.0 }
  0x4b   :  { %v127_v45 = vadd.f32 %v126_v33, %v123_v38  ;;  %v141_v46 = vmul.f32 %v446_v6, %v140_v43  ;;  %v144_v47 = vstv %s291_s7  ;;  %s476_s11 = sld [smem:[#allocation4 + $0x4]] }
  0x4c   :  { %v138_v49 = vadd.f32 %v137_v42, %v134_v39  ;;  %v145_v50 = vmul.f32 %v455_v13, %v144_v47  ;;  %s170_s12 = sld [smem:[#allocation6]]  ;;  %v148_v57 = vstv %s467_s8 }
  0x4d   :  { %v130_v51 = vadd.f32 %v129_v41, %v127_v45  ;;  %v152_v52 = vstv %s293_s9  ;;  %s298_s13 = sld [smem:[#allocation6 + $0x80]] }
  0x4e   :  { %v142_v53 = vadd.f32 %v141_v46, %v138_v49  ;;  %v153_v54 = vmul.f32 %v152_v52, %v434_v0  ;;  %v155_v55 = vstv %s294_s3  ;;  %s299_s14 = sld [smem:[#allocation6 + $0x100]] }
  0x4f   :  { %v156_v58 = vmul.f32 %v439_v1, %v155_v55  ;;  %v159_v59 = vstv %s295_s4  ;;  %s300_s15 = sld [smem:[#allocation6 + $0x180]]  ;;  %v489_v2 = vmax.f32 %v130_v51, 0.0 }
  0x50   :  { %v146_v61 = vadd.f32 %v145_v50, %v142_v53  ;;  %v160_v62 = vmul.f32 %v446_v6, %v159_v59  ;;  %v163_v63 = vstv %s296_s10  ;;  %s487_s16 = sld [smem:[#allocation6 + $0x200]] }
  0x51   :  { %v157_v0 = vadd.f32 %v156_v58, %v153_v54  ;;  %v164_v3 = vmul.f32 %v455_v13, %v163_v63  ;;  %s492_s17 = sld [smem:[#allocation7]]  ;;  %v167_v9 = vstv %s476_s11 }
  0x52   :  { %v149_v4 = vadd.f32 %v148_v57, %v146_v61  ;;  %v171_v1 = vstv %s170_s12  ;;  %s302_s18 = sld [smem:[#allocation6 + $0x1]] }
  0x53   :  { %v161_v5 = vadd.f32 %v160_v62, %v157_v0  ;;  %v172_v7 = vmul.f32 %v171_v1, %v480_v56  ;;  %v174_v8 = vstv %s298_s13  ;;  %s303_s19 = sld [smem:[#allocation6 + $0x81]] }
  0x54   :  { %v495_v6 = vmax.f32 %v149_v4, 0.0  ;;  %v175_v10 = vmul.f32 %v174_v8, %v484_v60  ;;  %v178_v11 = vstv %s299_s14  ;;  %s304_s20 = sld [smem:[#allocation6 + $0x101]] }
  0x55   :  { %v165_v12 = vadd.f32 %v164_v3, %v161_v5  ;;  %v179_v13 = vmul.f32 %v178_v11, %v489_v2  ;;  %v182_v14 = vstv %s300_s15  ;;  %s305_s21 = sld [smem:[#allocation6 + $0x181]] }
  0x56   :  { %v176_v15 = vadd.f32 %v175_v10, %v172_v7  ;;  %v183_v16 = vmul.f32 %v182_v14, %v495_v6  ;;  %s306_s22 = sld [smem:[#allocation6 + $0x201]]  ;;  %v186_v19 = vstv %s487_s16 }
  0x57   :  { %v168_v17 = vadd.f32 %v167_v9, %v165_v12  ;;  %s501_s23 = sld [smem:[#allocation7 + $0x1]]  ;;  %v190_v30 = vstv %s492_s17 }
  0x58   :  { %v180_v18 = vadd.f32 %v179_v13, %v176_v15  ;;  %v194_v20 = vstv %s302_s18  ;;  %s309_s24 = sld [smem:[#allocation6 + $0x2]] }
  0x59   :  { %v169_v21 = vmax.f32 %v168_v17, 0.0  ;;  %v195_v22 = vmul.f32 %v194_v20, %v480_v56  ;;  %v197_v23 = vstv %s303_s19  ;;  %s310_s25 = sld [smem:[#allocation6 + $0x82]] }
  0x5a   :  { %v184_v24 = vadd.f32 %v183_v16, %v180_v18  ;;  %v198_v25 = vmul.f32 %v197_v23, %v484_v60  ;;  %v201_v26 = vstv %s304_s20  ;;  %s311_s26 = sld [smem:[#allocation6 + $0x102]] }
  0x5b   :  { %v187_v27 = vmul.f32 %v186_v19, %v169_v21  ;;  %v202_v28 = vmul.f32 %v201_v26, %v489_v2  ;;  %v205_v29 = vstv %s305_s21  ;;  %s312_s2 = sld [smem:[#allocation6 + $0x182]] }
  0x5c   :  { %v199_v31 = vadd.f32 %v198_v25, %v195_v22  ;;  %v206_v32 = vmul.f32 %v205_v29, %v495_v6  ;;  %v209_v33 = vstv %s306_s22  ;;  %s313_s1 = sld [smem:[#allocation6 + $0x202]] }
  0x5d   :  { %v188_v34 = vadd.f32 %v187_v27, %v184_v24  ;;  %s509_s27 = sld [smem:[#allocation7 + $0x2]]  ;;  %v210_v36 = vmul.f32 %v209_v33, %v169_v21  ;;  %v213_v44 = vstv %s501_s23 }
  0x5e   :  { %v203_v35 = vadd.f32 %v202_v28, %v199_v31  ;;  %v218_v37 = vstv %s309_s24  ;;  %s316_s28 = sld [smem:[#allocation6 + $0x3]] }
  0x5f   :  { %v191_v38 = vadd.f32 %v190_v30, %v188_v34  ;;  %v219_v39 = vmul.f32 %v218_v37, %v480_v56  ;;  %v221_v40 = vstv %s310_s25  ;;  %s317_s29 = sld [smem:[#allocation6 + $0x83]] }
  0x60   :  { %v207_v41 = vadd.f32 %v206_v32, %v203_v35  ;;  %v222_v42 = vmul.f32 %v221_v40, %v484_v60  ;;  %v225_v43 = vstv %s311_s26  ;;  %s318_s30 = sld [smem:[#allocation6 + $0x103]] }
  0x61   :  { %192 = vst [vmem:[%s538_s5] sm:$0xff] %v191_v38  ;;  %v226_v45 = vmul.f32 %v225_v43, %v489_v2  ;;  %v229_v46 = vstv %s312_s2  ;;  %s319_s7 = sld [smem:[#allocation6 + $0x183]] }
  0x62   :  { %v211_v47 = vadd.f32 %v210_v36, %v207_v41  ;;  %v223_v48 = vadd.f32 %v222_v42, %v219_v39  ;;  %v230_v49 = vmul.f32 %v229_v46, %v495_v6  ;;  %v233_v50 = vstv %s313_s1  ;;  %s320_s8 = sld [smem:[#allocation6 + $0x203]] }
  0x63   :  { %v234_v53 = vmul.f32 %v233_v50, %v169_v21  ;;  %s321_s9 = sld [smem:[#allocation7 + $0x3]]  ;;  %v237_v62 = vstv %s509_s27 }
  0x64   :  { %v214_v51 = vadd.f32 %v213_v44, %v211_v47  ;;  %v227_v52 = vadd.f32 %v226_v45, %v223_v48  ;;  %v242_v54 = vstv %s316_s28 }
  0x65   :  { %v243_v55 = vmul.f32 %v242_v54, %v480_v56  ;;  %v245_v57 = vstv %s317_s29 }
  0x66   :  { %308 = vst [vmem:[%s538_s5 + $0x8] sm:$0xff] %v214_v51  ;;  %v231_v58 = vadd.f32 %v230_v49, %v227_v52  ;;  %v246_v59 = vmul.f32 %v245_v57, %v484_v60  ;;  %v249_v61 = vstv %s318_s30 }
  0x67   :  { %v250_v63 = vmul.f32 %v249_v61, %v489_v2  ;;  %v253_v0 = vstv %s319_s7 }
  0x68   :  { %v235_v3 = vadd.f32 %v234_v53, %v231_v58  ;;  %v247_v4 = vadd.f32 %v246_v59, %v243_v55  ;;  %v254_v1 = vmul.f32 %v253_v0, %v495_v6  ;;  %v257_v5 = vstv %s320_s8 }
  0x69   :  { %v258_v8 = vmul.f32 %v257_v5, %v169_v21  ;;  %v261_v10 = vstv %s321_s9 }
  0x6a   :  { %v238_v56 = vadd.f32 %v237_v62, %v235_v3  ;;  %v251_v7 = vadd.f32 %v250_v63, %v247_v4 }
  0x6c   :  { %315 = vst [vmem:[%s538_s5 + $0x10] sm:$0xff] %v238_v56  ;;  %v255_v9 = vadd.f32 %v254_v1, %v251_v7 }
  0x6e   :  { %v259_v60 = vadd.f32 %v258_v8, %v255_v9 }
  0x70   :  { %v262_v11 = vadd.f32 %v261_v10, %v259_v60 }
  0x72   :  { %322 = vst [vmem:[%s538_s5 + $0x18] sm:$0xff] %v262_v11 }
  0x73   :  { %269 = vsyncpa [#allocation3], 1 }
  0x74   :  { %270 = vsyncpa [#allocation5], 1 }
  0x75   :  { %271 = vsyncpa [#allocation8], 1 }

</bundles_post_ra>
